<compile_context>
chip_gen: v6e
topology: v6e:2x2x1
jax: 0.10.0
libtpu: 0.0.40
codegen_flags: <defaults>
</compile_context>

<pallas_src>
import math

import jax
import jax.numpy as jnp
from jax.experimental import pallas as pl
from jax.experimental.pallas import tpu as pltpu


def _spatial_broadcast_kernel(x_ref, o_ref):
    # x_ref: (TR, 1) column of per-(n, c) scalars for this block of rows.
    # o_ref: (TR, HW) tile: each row is its scalar splat across the lanes.
    o_ref[...] = jnp.broadcast_to(x_ref[...], o_ref.shape)


def _pick_block_rows(rows, hw, itemsize):
    """Largest sublane-aligned row block whose double-buffered in+out tiles
    fit a conservative VMEM budget (valid for v5e/v6e/v7x)."""
    lane_pad = lambda d: -(-d // 128) * 128
    # Per output row: lane-padded HW; per input row: the (TR, 1) column pads
    # its single lane up to 128. Both are double-buffered by the pipeline.
    per_row = 2 * (lane_pad(hw) + lane_pad(1)) * itemsize
    budget = 16 * 1024 * 1024  # pipeline-buffer budget, < vmem_limit below
    tr = max(8, budget // per_row)
    tr = (tr // 8) * 8  # sublane-aligned block rows
    if rows > 8:
        # Keep >= 2 grid steps so the "parallel" axis can shard across the
        # two TensorCores on v7x (no-op on single-TC v5e/v6e).
        half = (-(-rows // 2) + 7) // 8 * 8
        tr = min(tr, max(8, half))
    if tr >= rows:
        return rows  # full-extent block (allowed even if not a multiple of 8)
    return tr


def spatial_broadcast(x, resolution):
    """Pallas equivalent of SpatialBroadcast(resolution)(x).

    x: array of shape (..., C)
    returns: (N, C, H, W) with N = prod(x.shape[:-1])
    """
    h, w = resolution
    c = x.shape[-1]
    n = int(math.prod(x.shape[:-1]))
    rows = n * c
    hw = h * w

    if rows == 0 or hw == 0:
        return jnp.zeros((n, c, h, w), x.dtype)

    # TODO(synk): this op is pure data expansion (zero FLOPs); when possible,
    # prefer fusing the broadcast into the consumer (decoder conv / positional
    # embedding add) instead of materializing N*C*H*W bytes in HBM.

    x_col = x.reshape(rows, 1)  # free row-major reshape
    itemsize = jnp.dtype(x.dtype).itemsize
    tr = _pick_block_rows(rows, hw, itemsize)
    grid = (pl.cdiv(rows, tr),)

    out2d = pl.pallas_call(
        _spatial_broadcast_kernel,
        out_shape=jax.ShapeDtypeStruct((rows, hw), x.dtype),
        grid=grid,
        in_specs=[pl.BlockSpec((tr, 1), lambda i: (i, 0))],
        out_specs=pl.BlockSpec((tr, hw), lambda i: (i, 0)),
        compiler_params=pltpu.CompilerParams(
            dimension_semantics=("parallel",),
            vmem_limit_bytes=32 * 1024 * 1024,
        ),
    )(x_col)

    # Free reshape: row-major (N*C, H*W) has identical bytes to (N, C, H, W).
    return out2d.reshape(n, c, h, w)


if __name__ == "__main__":
    key = jax.random.PRNGKey(0)
    # Typical slot-attention usage: x has shape (batch, num_slots, slot_dim).
    batch, num_slots, slot_dim = 2, 4, 32
    resolution = (8, 8)

    x = jax.random.normal(key, (batch, num_slots, slot_dim), dtype=jnp.float32)

    out = spatial_broadcast(x, resolution)
    out = jax.block_until_ready(out)

    # Pure-JAX reference of the PyTorch forward pass.
    n = batch * num_slots
    ref = jnp.broadcast_to(
        x.reshape(n, slot_dim, 1, 1), (n, slot_dim, *resolution)
    )

    assert out.shape == (n, slot_dim, *resolution), out.shape
    assert out.dtype == x.dtype, out.dtype
    assert jnp.array_equal(out, ref), "mismatch vs reference"

    print("KERNEL_OK")
</pallas_src>

<mosaic_0001>
module attributes {stable_mosaic.version = 11 : i64} {
  func.func @_spatial_broadcast_kernel(%arg0: i32, %arg1: memref<128x1xf32, #tpu.memory_space<vmem>>, %arg2: memref<128x64xf32, #tpu.memory_space<vmem>>) attributes {dimension_semantics = [#tpu.dimension_semantics<parallel>], iteration_bounds = array<i64: 2>, scalar_prefetch = 0 : i64, scratch_operands = 0 : i64, tpu.core_type = #tpu.core_type<tc>, window_params = [{transform_indices = @transform_0, window_bounds = array<i64: 128, 1>}, {transform_indices = @transform_1, window_bounds = array<i64: 128, 64>}]} {
    %c0 = arith.constant 0 : index
    %c0_0 = arith.constant 0 : index
    %0 = vector.load %arg1[%c0, %c0_0] : memref<128x1xf32, #tpu.memory_space<vmem>>, vector<128x1xf32>
    %1 = vector.shape_cast %0 : vector<128x1xf32> to vector<128x1xf32>
    %2 = vector.broadcast %1 : vector<128x1xf32> to vector<128x64xf32>
    %c0_1 = arith.constant 0 : index
    %c0_2 = arith.constant 0 : index
    %3 = vector.load %arg2[%c0_1, %c0_2] : memref<128x64xf32, #tpu.memory_space<vmem>>, vector<128x64xf32>
    tpu.vector_store %arg2[%c0_1, %c0_2], %2 {strides = array<i32>} : memref<128x64xf32, #tpu.memory_space<vmem>>, vector<128x64xf32>,
    return
  }
  func.func @transform_0(%arg0: i32) -> (i32, i32) {
    %c0_i32 = arith.constant 0 : i32
    %c0_i32_0 = arith.constant 0 : i32
    return %arg0, %c0_i32 : i32, i32
  }
  func.func @transform_1(%arg0: i32) -> (i32, i32) {
    %c0_i32 = arith.constant 0 : i32
    %c0_i32_0 = arith.constant 0 : i32
    return %arg0, %c0_i32 : i32, i32
  }
}

</mosaic_0001>

<bundles_post_ra>
// kernel: tpu_custom_call.1
= control target key start
LH: loop header
LB: loop body
LE: loop exit
PB: predicated region body
PF: predicated region fallthrough
CT: control target
= control target key end

     0   :  { %s330_s6 = smov 0   ;;  %s388_s0 = inlined_call_operand.vmem [shape: f32[256,1], index: 0, kind: input, shape index: {}]   ;;  %s389_s1 = inlined_call_operand.vmem [shape: f32[256,64], index: 1, kind: output, shape index: {}]  }
   0x1 LB: > { %s289_s7 = sadd.s32 4294967295, %s317_s6   ;;  %p293_p0 = scmp.ge.s32.totalorder %s317_s6, 1  ;;  %s317_s6 = sphi %s330_s6, %s11_s6  }
   0x2   : > { %p88_p1 = scmp.lt.s32.totalorder %s317_s6, 3 }
   0x4   : > { %p89_p2 = pnand %p293_p0, %p88_p1 }
   0x5   : > { %s294_s8 = sshll.u32 (!%p89_p2), %s289_s7, 4 }
   0x6   : > { %92 = sbr.rel (%p89_p2) target bundleno = 168 (0xa8), region = 24  ;;  %p109_p3 = scmp.lt.s32.totalorder (!%p89_p2), %s294_s8, 31 }
   0xb   : > { %v319_v0 = vmov 0   ;;  %s391_s8 = smov (!%p109_p3, %s294_s8), 31  ;;  %vm216_vm0 = vcmask 523264  }
   0xc   : > { %310 = vset.pattern.permute.xlu1 %v319_v0  ;;  %309 = vset.pattern.permute.xlu0 %v319_v0  ;;  %s295_s9 = sshll.u32 %s391_s8, 3 }
   0xd   : > { %s112_s12 = scalar_lea.vmem %s388_s0, %s295_s9  ;;  %s351_s15 = scalar_lea.vmem %s389_s1, %s295_s9 }
   0xe   : > { %v122_v1 = vld [vmem:[%s112_s12 + $0x10] sm:$0xff]  ;;  %v120_v2 = vld [vmem:[%s112_s12] sm:$0xff]  ;;  %v123_v3 = vld [vmem:[%s112_s12 + $0x18] sm:$0xff] }
   0xf   : > { %148 = vperm.xlu1 %310, %v122_v1   ;;  %138 = vperm.xlu0 %309, %v120_v2   ;;  %v121_v4 = vld [vmem:[%s112_s12 + $0x8] sm:$0xff]  ;;  %v124_v6 = vld [vmem:[%s112_s12 + $0x20] sm:$0xff]  ;;  %v127_v7 = vld [vmem:[%s112_s12 + $0x38] sm:$0xff] }
  0x10   : > { %v125_v5 = vld [vmem:[%s112_s12 + $0x28] sm:$0xff]  ;;  %v126_v8 = vld [vmem:[%s112_s12 + $0x30] sm:$0xff]  ;;  %v128_v10 = vld [vmem:[%s112_s12 + $0x40] sm:$0xff] }
  0x11   : > { %v129_v9 = vld [vmem:[%s112_s12 + $0x48] sm:$0xff]  ;;  %v131_v11 = vld [vmem:[%s112_s12 + $0x58] sm:$0xff]  ;;  %v130_v12 = vld [vmem:[%s112_s12 + $0x50] sm:$0xff] }
  0x12   : > { %v133_v13 = vld [vmem:[%s112_s12 + $0x68] sm:$0xff]  ;;  %v132_v14 = vld [vmem:[%s112_s12 + $0x60] sm:$0xff]  ;;  %v135_v15 = vld [vmem:[%s112_s12 + $0x78] sm:$0xff] }
  0x13   : > { %153 = vperm.xlu1 %310, %v123_v3   ;;  %143 = vperm.xlu0 %309, %v121_v4   ;;  %v134_v16 = vld [vmem:[%s112_s12 + $0x70] sm:$0xff] }
  0x17   : > { %163 = vperm.xlu1 %310, %v125_v5   ;;  %158 = vperm.xlu0 %309, %v124_v6  }
  0x1b   : > { %173 = vperm.xlu1 %310, %v127_v7   ;;  %168 = vperm.xlu0 %309, %v126_v8  }
  0x1f   : > { %183 = vperm.xlu1 %310, %v129_v9   ;;  %178 = vperm.xlu0 %309, %v128_v10  }
  0x23   : > { %193 = vperm.xlu1 %310, %v131_v11   ;;  %188 = vperm.xlu0 %309, %v130_v12  }
  0x27   : > { %203 = vperm.xlu1 %310, %v133_v13   ;;  %198 = vperm.xlu0 %309, %v132_v14  }
  0x2b   : > { %213 = vperm.xlu1 %310, %v135_v15   ;;  %208 = vperm.xlu0 %309, %v134_v16  }
  0x8a   : > { %v149_v17 = vpop.permute.xlu1 %148  ;;  %v139_v18 = vpop.permute.xlu0 %138 }
  0x8b   : > { %219 = vst.msk [vmem:[%s351_s15 + $0x10] sm:$0xff] %vm216_vm0, %v149_v17  ;;  %217 = vst.msk [vmem:[%s351_s15] sm:$0xff] %vm216_vm0, %v139_v18 }
  0x8e   : > { %v154_v19 = vpop.permute.xlu1 %153  ;;  %v144_v20 = vpop.permute.xlu0 %143 }
  0x8f   : > { %220 = vst.msk [vmem:[%s351_s15 + $0x18] sm:$0xff] %vm216_vm0, %v154_v19  ;;  %218 = vst.msk [vmem:[%s351_s15 + $0x8] sm:$0xff] %vm216_vm0, %v144_v20 }
  0x92   : > { %v164_v21 = vpop.permute.xlu1 %163  ;;  %v159_v22 = vpop.permute.xlu0 %158 }
  0x93   : > { %222 = vst.msk [vmem:[%s351_s15 + $0x28] sm:$0xff] %vm216_vm0, %v164_v21  ;;  %221 = vst.msk [vmem:[%s351_s15 + $0x20] sm:$0xff] %vm216_vm0, %v159_v22 }
  0x96   : > { %v174_v23 = vpop.permute.xlu1 %173  ;;  %v169_v24 = vpop.permute.xlu0 %168 }
  0x97   : > { %224 = vst.msk [vmem:[%s351_s15 + $0x38] sm:$0xff] %vm216_vm0, %v174_v23  ;;  %223 = vst.msk [vmem:[%s351_s15 + $0x30] sm:$0xff] %vm216_vm0, %v169_v24 }
  0x9a   : > { %v184_v25 = vpop.permute.xlu1 %183  ;;  %v179_v26 = vpop.permute.xlu0 %178 }
  0x9b   : > { %226 = vst.msk [vmem:[%s351_s15 + $0x48] sm:$0xff] %vm216_vm0, %v184_v25  ;;  %225 = vst.msk [vmem:[%s351_s15 + $0x40] sm:$0xff] %vm216_vm0, %v179_v26 }
  0x9e   : > { %v194_v27 = vpop.permute.xlu1 %193  ;;  %v189_v28 = vpop.permute.xlu0 %188 }
  0x9f   : > { %228 = vst.msk [vmem:[%s351_s15 + $0x58] sm:$0xff] %vm216_vm0, %v194_v27  ;;  %227 = vst.msk [vmem:[%s351_s15 + $0x50] sm:$0xff] %vm216_vm0, %v189_v28 }
  0xa2   : > { %v204_v29 = vpop.permute.xlu1 %203  ;;  %v199_v30 = vpop.permute.xlu0 %198 }
  0xa3   : > { %230 = vst.msk [vmem:[%s351_s15 + $0x68] sm:$0xff] %vm216_vm0, %v204_v29  ;;  %229 = vst.msk [vmem:[%s351_s15 + $0x60] sm:$0xff] %vm216_vm0, %v199_v30 }
  0xa6   : > { %v214_v31 = vpop.permute.xlu1 %213  ;;  %v209_v32 = vpop.permute.xlu0 %208 }
  0xa7   : > { %232 = vst.msk [vmem:[%s351_s15 + $0x78] sm:$0xff] %vm216_vm0, %v214_v31  ;;  %231 = vst.msk [vmem:[%s351_s15 + $0x70] sm:$0xff] %vm216_vm0, %v209_v32 }
  0xa8 PF: > { %s11_s6 = sadd.s32 1, %s317_s6  }
  0xa9   : > { %p8_p4 = scmp.ge.s32.totalorder %s11_s6, 4  }
  0xab   :  { %10 = sbr.rel (!%p8_p4) target bundleno = 1 (0x1), region = 54 }

</bundles_post_ra>
